<compile_context>
chip_gen: v5e
topology: v5e:2x2
jax: 0.10.0
libtpu: 0.0.40
codegen_flags: <defaults>
</compile_context>

<pallas_src>
import functools

import jax
import jax.numpy as jnp
from jax import lax
from jax.experimental import pallas as pl
from jax.experimental.pallas import tpu as pltpu

BN_EPS = 1e-5


def _vmem_limit_bytes():
    # ~70% of physical VMEM, capped at 64 MiB: 64 MiB on 128 MiB parts (v5e/v6e),
    # ~45 MiB on the 64 MiB v7x TensorCore (leaves compiler scratch headroom).
    try:
        cap = int(pltpu.get_tpu_info().vmem_capacity_bytes)
        return min(64 * 1024 * 1024, int(cap * 0.7))
    except Exception:
        return 64 * 1024 * 1024


_VMEM_LIMIT = _vmem_limit_bytes()


def _is_v5():
    try:
        return "v5" in jax.devices()[0].device_kind.lower()
    except Exception:
        return False


# ---------------------------------------------------------------------------
# Kernel 1: conv1 (kT x 1 x 1 temporal conv) + folded-BN bias + ReLU
#   Temporal zero-padding is emulated in-kernel (clamp + mask), so the input
#   activation is never re-materialized padded in HBM.
# ---------------------------------------------------------------------------
def _conv1_kernel(x_ref, w_ref, b_ref, o_ref, *, kT, ts, pad_t, T):
    # x_ref: (1, T, TR, Cin) bf16   (full unpadded T axis, one HW tile)
    # w_ref: (kT, Cin, Cmid) bf16   (BN scale folded in)
    # b_ref: (1, Cmid) f32
    # o_ref: (1, 1, TR, Cmid) bf16
    j = pl.program_id(2)
    acc = None
    for kt in range(kT):
        t_in = j * ts - pad_t + kt
        if pad_t == 0:
            part = jnp.dot(x_ref[0, t_in], w_ref[kt],
                           preferred_element_type=jnp.float32)
        else:
            t_c = jnp.clip(t_in, 0, T - 1)
            part = jnp.dot(x_ref[0, t_c], w_ref[kt],
                           preferred_element_type=jnp.float32)
            valid = jnp.logical_and(t_in >= 0, t_in < T)
            part = jnp.where(valid, part, 0.0)       # boundary tap -> zero pad
        acc = part if acc is None else acc + part
    y = jnp.maximum(acc + b_ref[...], 0.0)
    o_ref[0, 0] = y.astype(o_ref.dtype)


def _pick_hw_tile(hw, t, cin, cmid, kT, budget_bytes):
    """Largest HW tile whose double-buffered footprint fits the budget."""
    for cand in (4096, 2048, 1024, 512, 256, 128, 64, 32, 16, 8):
        if hw % cand:
            continue
        fp = (2 * t * cand * cin * 2       # input blocks (bf16, double-buffered)
              + 2 * cand * cmid * 2        # output blocks (bf16, double-buffered)
              + 2 * kT * cin * cmid * 2    # folded weights (bf16)
              + 2 * cmid * 4)              # bias (f32)
        if fp <= budget_bytes:
            return cand
    return hw  # fall back to the full (untiled) HW axis


def conv1_pallas(x, w1f, b1, *, kT, ts, pad_t, to):
    n, T, hw, cin = x.shape
    cmid = w1f.shape[-1]
    tr = _pick_hw_tile(hw, T, cin, cmid, kT, budget_bytes=(_VMEM_LIMIT * 3) // 5)
    r = hw // tr
    return pl.pallas_call(
        functools.partial(_conv1_kernel, kT=kT, ts=ts, pad_t=pad_t, T=T),
        out_shape=jax.ShapeDtypeStruct((n, to, hw, cmid), jnp.bfloat16),
        grid_spec=pltpu.PrefetchScalarGridSpec(
            num_scalar_prefetch=0,
            grid=(n, r, to),  # `to` innermost -> the x block (indep. of to) is reused
            in_specs=[
                pl.BlockSpec((1, T, tr, cin), lambda b, i, j: (b, 0, i, 0)),
                pl.BlockSpec((kT, cin, cmid), lambda b, i, j: (0, 0, 0)),
                pl.BlockSpec((1, cmid), lambda b, i, j: (0, 0)),
            ],
            out_specs=pl.BlockSpec((1, 1, tr, cmid), lambda b, i, j: (b, j, i, 0)),
        ),
        compiler_params=pltpu.CompilerParams(
            dimension_semantics=("parallel", "parallel", "parallel"),
            vmem_limit_bytes=_VMEM_LIMIT),
        cost_estimate=pl.CostEstimate(
            flops=2 * n * to * hw * kT * cin * cmid,
            transcendentals=0,
            bytes_accessed=x.size * 2 + w1f.size * 2 + n * to * hw * cmid * 2),
    )(x, w1f, b1)


# ---------------------------------------------------------------------------
# Kernel 2: conv2 (1x3x3) + BN + ReLU + conv3 (1x1x1) + BN, fully fused.
#   9 statically-offset, sublane-aligned tap matmuls accumulated in f32, bias+ReLU,
#   1x1x1 projection against a VMEM-resident weight, bf16 store with the padded
#   columns dropped in-kernel.
# ---------------------------------------------------------------------------
def _conv23_kernel(x_ref, w2_ref, b2_ref, w3_ref, b3_ref, o_ref, *, taps, th, wps, wo):
    # x_ref : (1, s, s, Lp, C) bf16   phase-decomposed padded activation slab
    # w2_ref: (9, C, Cm) bf16 ; b2_ref: (1, Cm) f32
    # w3_ref: (Cm, Co) bf16   ; b3_ref: (1, Co) f32
    # o_ref : (1, th, wo, Co) bf16
    mb = th * wps                                     # wps % 8 == 0 -> mb % 8 == 0
    base = pl.multiple_of(pl.program_id(1) * mb, 8)
    acc = None
    for (ph, pw, hoff, woff, k) in taps:
        start = base + hoff * wps + woff
        if woff % 8 == 0:
            start = pl.multiple_of(start, 8)          # sublane-aligned tap read
        win = x_ref[0, ph, pw, pl.ds(start, mb), :]
        part = jnp.dot(win, w2_ref[k], preferred_element_type=jnp.float32)
        acc = part if acc is None else acc + part
    mid = jnp.maximum(acc + b2_ref[...], 0.0)
    out = jnp.dot(mid.astype(w3_ref.dtype), w3_ref[...],
                  preferred_element_type=jnp.float32) + b3_ref[...]
    out = out.reshape(th, wps, -1)[:, :wo, :]         # drop padded columns in-kernel
    o_ref[0] = out.astype(o_ref.dtype)


def _prep_conv2(y, s, d, m_target):
    """Phase-decompose the channels-last activation for stride s / dilation d.

    A single pad covers the conv padding, the stride round-up, the sublane alignment
    of the per-phase row width (multiple of 8) and the last-block halo, so only one
    activation copy is made (plus the phase transpose when s > 1; s == 1 is a view).
    """
    nt, h, w, c = y.shape
    ho = (h - 1) // s + 1
    wo = (w - 1) // s + 1
    wps = -(-(w + 2 * d) // s)
    wps = -(-wps // 8) * 8                       # sublane-aligned per-phase row width
    hoff_max = (2 * d) // s
    th = max(1, -(-m_target // wps))
    th = min(th, ho)
    hob = -(-ho // th)
    hps = hob * th + hoff_max + 1                # rows incl. partial last block + halo
    hp2, wp2 = hps * s, wps * s
    yp = jnp.pad(y, ((0, 0), (d, hp2 - h - d), (d, wp2 - w - d), (0, 0)))
    if s == 1:
        phases = yp.reshape(nt, 1, 1, hps * wps, c)           # pure view, no transpose
    else:
        phases = yp.reshape(nt, hps, s, wps, s, c).transpose(0, 2, 4, 1, 3, 5)
        phases = phases.reshape(nt, s, s, hps * wps, c)
    taps = tuple(((kh * d) % s, (kw * d) % s, (kh * d) // s, (kw * d) // s,
                  kh * 3 + kw) for kh in range(3) for kw in range(3))
    return phases, ho, wo, wps, th, hob, taps


def conv23_pallas(phases, w2f, b2, w3f, b3, *, th, hob, wps, wo, taps):
    nt, s1, s2, lp, c = phases.shape
    cm = w2f.shape[-1]
    co = w3f.shape[-1]
    mb = th * wps
    # TODO(synk): for very large per-frame slabs on v7x (64 MiB VMEM), tile the Lp axis
    # with an (hoff_max+1)*wps halo instead of keeping the whole slab resident, and
    # single-buffer the constant weight operands (pipeline_mode=pl.Buffered(1)).
    return pl.pallas_call(
        functools.partial(_conv23_kernel, taps=taps, th=th, wps=wps, wo=wo),
        out_shape=jax.ShapeDtypeStruct((nt, hob * th, wo, co), jnp.bfloat16),
        grid_spec=pltpu.PrefetchScalarGridSpec(
            num_scalar_prefetch=0,
            grid=(nt, hob),  # slab block depends only on nt -> reused across row blocks
            in_specs=[
                pl.BlockSpec((1, s1, s2, lp, c), lambda i, j: (i, 0, 0, 0, 0)),
                pl.BlockSpec((9, c, cm), lambda i, j: (0, 0, 0)),
                pl.BlockSpec((1, cm), lambda i, j: (0, 0)),
                pl.BlockSpec((cm, co), lambda i, j: (0, 0)),
                pl.BlockSpec((1, co), lambda i, j: (0, 0)),
            ],
            out_specs=pl.BlockSpec((1, th, wo, co), lambda i, j: (i, j, 0, 0)),
        ),
        compiler_params=pltpu.CompilerParams(
            dimension_semantics=("parallel", "parallel"),
            vmem_limit_bytes=_VMEM_LIMIT),
        cost_estimate=pl.CostEstimate(
            flops=2 * nt * hob * mb * (9 * c * cm + cm * co),
            transcendentals=0,
            bytes_accessed=(phases.size * 2 + w2f.size * 2 + w3f.size * 2
                            + nt * hob * th * wo * co * 2)),
    )(phases, w2f, b2, w3f, b3)


# ---------------------------------------------------------------------------
# Bottleneck forward (Pallas-backed)
# ---------------------------------------------------------------------------
def bottleneck_forward(x_ncdhw, params, *, stride, dilation=1,
                       use_temp_conv=1, temp_stride=1):
    n, cin, t, h, w = x_ncdhw.shape
    kT = 1 + 2 * use_temp_conv
    pad_t = use_temp_conv
    to = (t + 2 * pad_t - kT) // temp_stride + 1

    # ---- fold frozen-BN scale into the conv weights (exact), cast to bf16 ----
    cmid = params["w1"].shape[0]
    cout = params["w3"].shape[0]
    w1f = params["w1"][:, :, :, 0, 0] * params["s1"][:, None, None]
    w1f = jnp.transpose(w1f, (2, 1, 0)).astype(jnp.bfloat16)            # (kT, Cin, Cmid)
    b1 = params["b1"].reshape(1, cmid).astype(jnp.float32)
    w2f = params["w2"][:, :, 0] * params["s2"][:, None, None, None]
    w2f = jnp.transpose(w2f, (2, 3, 1, 0)).reshape(9, cmid, cmid).astype(jnp.bfloat16)
    b2 = params["b2"].reshape(1, cmid).astype(jnp.float32)
    w3f = (params["w3"][:, :, 0, 0, 0] * params["s3"][:, None]).T.astype(jnp.bfloat16)
    b3 = params["b3"].reshape(1, cout).astype(jnp.float32)

    # ---- conv1 + BN + ReLU (temporal padding handled in-kernel, no HBM pad copy) ----
    xc = jnp.transpose(x_ncdhw, (0, 2, 3, 4, 1)).reshape(n, t, h * w, cin)
    xc = xc.astype(jnp.bfloat16)
    y1 = conv1_pallas(xc, w1f, b1, kT=kT, ts=temp_stride, pad_t=pad_t, to=to)

    # ---- conv2 + BN + ReLU + conv3 + BN (fused, bf16 channels-last output) ----
    y1 = y1.reshape(n * to, h, w, cmid)
    m_target = 256 if _is_v5() else 512          # smaller M tile on v5e (1 vst slot)
    phases, ho, wo, wps, th, hob, taps = _prep_conv2(y1, stride, dilation, m_target)
    out = conv23_pallas(phases, w2f, b2, w3f, b3,
                        th=th, hob=hob, wps=wps, wo=wo, taps=taps)
    out = out.reshape(n, to, hob * th, wo, cout)
    if hob * th != ho:
        out = out[:, :, :ho]                     # cheap bf16 row crop (often a no-op)
    # NCDHW + f32 to match the module interface; the cast fuses with the transpose.
    # TODO(synk): stay channels-last bf16 end-to-end if the surrounding net allows it.
    return jnp.transpose(out, (0, 4, 1, 2, 3)).astype(jnp.float32)


# ---------------------------------------------------------------------------
# Parameter construction (matches module __init__ semantics)
# ---------------------------------------------------------------------------
def kaiming_conv_weight(key, cout, cin, kt, kh, kw):
    fan_in = cin * kt * kh * kw
    std = (2.0 / fan_in) ** 0.5
    return jax.random.normal(key, (cout, cin, kt, kh, kw), jnp.float32) * std


def make_bottleneck_params(key, dim_in, dim_out, dim_inner, use_temp_conv=1):
    k1, k2, k3, kbn = jax.random.split(key, 4)
    kT1 = 1 + use_temp_conv * 2
    w1 = kaiming_conv_weight(k1, dim_inner, dim_in, kT1, 1, 1)
    w2 = kaiming_conv_weight(k2, dim_inner, dim_inner, 1, 3, 3)
    w3 = kaiming_conv_weight(k3, dim_out, dim_inner, 1, 1, 1)

    # FrozenBatchNorm3d: gamma=1, beta=0 (module init); running stats given
    # non-trivial values (as if loaded from a checkpoint) to exercise BN folding.
    def frozen_bn(c, k):
        km, kv = jax.random.split(k)
        gamma = jnp.ones((c,), jnp.float32)
        beta = jnp.zeros((c,), jnp.float32)
        mean = 0.1 * jax.random.normal(km, (c,), jnp.float32)
        var = 0.5 + jax.random.uniform(kv, (c,), jnp.float32)
        scale = gamma / jnp.sqrt(var + BN_EPS)
        bias = beta - mean * scale
        return scale, bias

    kb1, kb2, kb3 = jax.random.split(kbn, 3)
    s1, b1 = frozen_bn(dim_inner, kb1)
    s2, b2 = frozen_bn(dim_inner, kb2)
    s3, b3 = frozen_bn(dim_out, kb3)
    return dict(w1=w1, s1=s1, b1=b1, w2=w2, s2=s2, b2=b2, w3=w3, s3=s3, b3=b3)


# ---------------------------------------------------------------------------
# Reference: lax.conv with the same bf16 operand quantisation as the kernel
# (bf16 inputs/weights, f32 accumulation, bf16 storage between convs)
# ---------------------------------------------------------------------------
def bottleneck_ref(x, p, *, stride, dilation=1, use_temp_conv=1, temp_stride=1):
    def conv(inp, w, strides, padding, dil):
        return lax.conv_general_dilated(
            inp.astype(jnp.bfloat16), w.astype(jnp.bfloat16),
            window_strides=strides, padding=padding, rhs_dilation=dil,
            dimension_numbers=("NCDHW", "OIDHW", "NCDHW"),
            preferred_element_type=jnp.float32)

    def bn(y, s, b):
        return y * s[None, :, None, None, None] + b[None, :, None, None, None]

    pt = use_temp_conv
    y = bn(conv(x, p["w1"], (temp_stride, 1, 1),
                [(pt, pt), (0, 0), (0, 0)], (1, 1, 1)), p["s1"], p["b1"])
    y = jnp.maximum(y, 0.0).astype(jnp.bfloat16).astype(jnp.float32)
    y = bn(conv(y, p["w2"], (1, stride, stride),
                [(0, 0), (dilation, dilation), (dilation, dilation)],
                (1, dilation, dilation)), p["s2"], p["b2"])
    y = jnp.maximum(y, 0.0)
    y = bn(conv(y, p["w3"], (1, 1, 1),
                [(0, 0), (0, 0), (0, 0)], (1, 1, 1)), p["s3"], p["b3"])
    return y


# ---------------------------------------------------------------------------
def _run_case(name, key, *, n, cin, t, h, w, dim_inner, dim_out,
              stride, dilation, use_temp_conv, temp_stride):
    kx, kp = jax.random.split(key)
    x = jax.random.normal(kx, (n, cin, t, h, w), jnp.float32)
    params = make_bottleneck_params(kp, cin, dim_out, dim_inner, use_temp_conv)

    out = bottleneck_forward(x, params, stride=stride, dilation=dilation,
                             use_temp_conv=use_temp_conv, temp_stride=temp_stride)
    out = jax.block_until_ready(out)
    ref = bottleneck_ref(x, params, stride=stride, dilation=dilation,
                         use_temp_conv=use_temp_conv, temp_stride=temp_stride)
    ref = jax.block_until_ready(ref)

    assert out.shape == ref.shape, (name, out.shape, ref.shape)
    err = float(jnp.max(jnp.abs(out - ref)))
    # bf16 operands + bf16 final store -> relaxed (still tight) tolerance
    assert jnp.allclose(out, ref, atol=5e-2, rtol=5e-2), (name, err)


if __name__ == "__main__":
    key = jax.random.PRNGKey(0)
    k1, k2 = jax.random.split(key)
    # Case 1: temporal conv, spatial stride 2 (downsampling bottleneck).
    _run_case("stride2", k1, n=2, cin=4, t=4, h=8, w=8, dim_inner=8, dim_out=16,
              stride=2, dilation=1, use_temp_conv=1, temp_stride=1)
    # Case 2: spatial stride 1, temporal stride 2.
    _run_case("stride1", k2, n=2, cin=4, t=4, h=8, w=8, dim_inner=8, dim_out=16,
              stride=1, dilation=1, use_temp_conv=1, temp_stride=2)
    print("KERNEL_OK")
</pallas_src>

<mosaic_0001>
module attributes {stable_mosaic.version = 11 : i64} {
  func.func @_conv1_kernel(%arg0: i32, %arg1: i32, %arg2: i32, %arg3: memref<1x4x64x4xbf16, #tpu.memory_space<vmem>>, %arg4: memref<3x4x8xbf16, #tpu.memory_space<vmem>>, %arg5: memref<1x8xf32, #tpu.memory_space<vmem>>, %arg6: memref<1x1x64x8xbf16, #tpu.memory_space<vmem>>) attributes {dimension_semantics = [#tpu.dimension_semantics<parallel>, #tpu.dimension_semantics<parallel>, #tpu.dimension_semantics<parallel>], iteration_bounds = array<i64: 2, 1, 4>, scalar_prefetch = 0 : i64, scratch_operands = 0 : i64, tpu.core_type = #tpu.core_type<tc>, window_params = [{transform_indices = @transform_0, window_bounds = array<i64: 1, 4, 64, 4>}, {pipeline_mode = #tpu.pipeline_mode<synchronous>, transform_indices = @transform_1, window_bounds = array<i64: 3, 4, 8>}, {pipeline_mode = #tpu.pipeline_mode<synchronous>, transform_indices = @transform_2, window_bounds = array<i64: 1, 8>}, {transform_indices = @transform_3, window_bounds = array<i64: 1, 1, 64, 8>}]} {
    %c1_i32 = arith.constant 1 : i32
    %0 = arith.muli %arg2, %c1_i32 : i32
    %c1_i32_0 = arith.constant 1 : i32
    %1 = arith.subi %0, %c1_i32_0 : i32
    %c0_i32 = arith.constant 0 : i32
    %2 = arith.addi %1, %c0_i32 : i32
    %c0_i32_1 = arith.constant 0 : i32
    %c3_i32 = arith.constant 3 : i32
    %3 = arith.maxsi %c0_i32_1, %2 : i32
    %4 = arith.minsi %c3_i32, %3 : i32
    %c0 = arith.constant 0 : index
    %5 = arith.index_cast %4 : i32 to index
    %c0_2 = arith.constant 0 : index
    %c0_3 = arith.constant 0 : index
    %6 = vector.load %arg3[%c0, %5, %c0_2, %c0_3] : memref<1x4x64x4xbf16, #tpu.memory_space<vmem>>, vector<1x1x64x4xbf16>
    %7 = vector.shape_cast %6 : vector<1x1x64x4xbf16> to vector<64x4xbf16>
    %c0_4 = arith.constant 0 : index
    %c0_5 = arith.constant 0 : index
    %c0_6 = arith.constant 0 : index
    %8 = vector.load %arg4[%c0_4, %c0_5, %c0_6] : memref<3x4x8xbf16, #tpu.memory_space<vmem>>, vector<1x4x8xbf16>
    %9 = vector.shape_cast %8 : vector<1x4x8xbf16> to vector<4x8xbf16>
    %cst = arith.constant dense<0.000000e+00> : vector<64x8xf32>
    %10 = tpu.matmul %7, %9, %cst {dimension_numbers = #tpu.dot_dimension_numbers<[1], [0], [0], [1], [0, 0, 1, 1], [], []>} : vector<64x4xbf16>, vector<4x8xbf16>, vector<64x8xf32> -> vector<64x8xf32>
    %c0_i32_7 = arith.constant 0 : i32
    %11 = arith.cmpi sge, %2, %c0_i32_7 : i32
    %c4_i32 = arith.constant 4 : i32
    %12 = arith.cmpi slt, %2, %c4_i32 : i32
    %13 = arith.andi %11, %12 : i1
    %cst_8 = arith.constant 0.000000e+00 : f32
    %14 = vector.broadcast %cst_8 : f32 to vector<64x8xf32>
    %15 = arith.select %13, %10, %14 : vector<64x8xf32>
    %c1_i32_9 = arith.constant 1 : i32
    %16 = arith.muli %arg2, %c1_i32_9 : i32
    %c1_i32_10 = arith.constant 1 : i32
    %17 = arith.subi %16, %c1_i32_10 : i32
    %c1_i32_11 = arith.constant 1 : i32
    %18 = arith.addi %17, %c1_i32_11 : i32
    %c0_i32_12 = arith.constant 0 : i32
    %c3_i32_13 = arith.constant 3 : i32
    %19 = arith.maxsi %c0_i32_12, %18 : i32
    %20 = arith.minsi %c3_i32_13, %19 : i32
    %c0_14 = arith.constant 0 : index
    %21 = arith.index_cast %20 : i32 to index
    %c0_15 = arith.constant 0 : index
    %c0_16 = arith.constant 0 : index
    %22 = vector.load %arg3[%c0_14, %21, %c0_15, %c0_16] : memref<1x4x64x4xbf16, #tpu.memory_space<vmem>>, vector<1x1x64x4xbf16>
    %23 = vector.shape_cast %22 : vector<1x1x64x4xbf16> to vector<64x4xbf16>
    %c1 = arith.constant 1 : index
    %c0_17 = arith.constant 0 : index
    %c0_18 = arith.constant 0 : index
    %24 = vector.load %arg4[%c1, %c0_17, %c0_18] : memref<3x4x8xbf16, #tpu.memory_space<vmem>>, vector<1x4x8xbf16>
    %25 = vector.shape_cast %24 : vector<1x4x8xbf16> to vector<4x8xbf16>
    %cst_19 = arith.constant dense<0.000000e+00> : vector<64x8xf32>
    %26 = tpu.matmul %23, %25, %cst_19 {dimension_numbers = #tpu.dot_dimension_numbers<[1], [0], [0], [1], [0, 0, 1, 1], [], []>} : vector<64x4xbf16>, vector<4x8xbf16>, vector<64x8xf32> -> vector<64x8xf32>
    %c0_i32_20 = arith.constant 0 : i32
    %27 = arith.cmpi sge, %18, %c0_i32_20 : i32
    %c4_i32_21 = arith.constant 4 : i32
    %28 = arith.cmpi slt, %18, %c4_i32_21 : i32
    %29 = arith.andi %27, %28 : i1
    %cst_22 = arith.constant 0.000000e+00 : f32
    %30 = vector.broadcast %cst_22 : f32 to vector<64x8xf32>
    %31 = arith.select %29, %26, %30 : vector<64x8xf32>
    %32 = arith.addf %15, %31 : vector<64x8xf32>
    %c1_i32_23 = arith.constant 1 : i32
    %33 = arith.muli %arg2, %c1_i32_23 : i32
    %c1_i32_24 = arith.constant 1 : i32
    %34 = arith.subi %33, %c1_i32_24 : i32
    %c2_i32 = arith.constant 2 : i32
    %35 = arith.addi %34, %c2_i32 : i32
    %c0_i32_25 = arith.constant 0 : i32
    %c3_i32_26 = arith.constant 3 : i32
    %36 = arith.maxsi %c0_i32_25, %35 : i32
    %37 = arith.minsi %c3_i32_26, %36 : i32
    %c0_27 = arith.constant 0 : index
    %38 = arith.index_cast %37 : i32 to index
    %c0_28 = arith.constant 0 : index
    %c0_29 = arith.constant 0 : index
    %39 = vector.load %arg3[%c0_27, %38, %c0_28, %c0_29] : memref<1x4x64x4xbf16, #tpu.memory_space<vmem>>, vector<1x1x64x4xbf16>
    %40 = vector.shape_cast %39 : vector<1x1x64x4xbf16> to vector<64x4xbf16>
    %c2 = arith.constant 2 : index
    %c0_30 = arith.constant 0 : index
    %c0_31 = arith.constant 0 : index
    %41 = vector.load %arg4[%c2, %c0_30, %c0_31] : memref<3x4x8xbf16, #tpu.memory_space<vmem>>, vector<1x4x8xbf16>
    %42 = vector.shape_cast %41 : vector<1x4x8xbf16> to vector<4x8xbf16>
    %cst_32 = arith.constant dense<0.000000e+00> : vector<64x8xf32>
    %43 = tpu.matmul %40, %42, %cst_32 {dimension_numbers = #tpu.dot_dimension_numbers<[1], [0], [0], [1], [0, 0, 1, 1], [], []>} : vector<64x4xbf16>, vector<4x8xbf16>, vector<64x8xf32> -> vector<64x8xf32>
    %c0_i32_33 = arith.constant 0 : i32
    %44 = arith.cmpi sge, %35, %c0_i32_33 : i32
    %c4_i32_34 = arith.constant 4 : i32
    %45 = arith.cmpi slt, %35, %c4_i32_34 : i32
    %46 = arith.andi %44, %45 : i1
    %cst_35 = arith.constant 0.000000e+00 : f32
    %47 = vector.broadcast %cst_35 : f32 to vector<64x8xf32>
    %48 = arith.select %46, %43, %47 : vector<64x8xf32>
    %49 = arith.addf %32, %48 : vector<64x8xf32>
    %c0_36 = arith.constant 0 : index
    %c0_37 = arith.constant 0 : index
    %50 = vector.load %arg5[%c0_36, %c0_37] : memref<1x8xf32, #tpu.memory_space<vmem>>, vector<1x8xf32>
    %51 = vector.broadcast %50 : vector<1x8xf32> to vector<64x8xf32>
    %52 = arith.addf %49, %51 : vector<64x8xf32>
    %cst_38 = arith.constant 0.000000e+00 : f32
    %53 = vector.broadcast %cst_38 : f32 to vector<64x8xf32>
    %54 = arith.maximumf %52, %53 : vector<64x8xf32>
    %55 = arith.truncf %54 : vector<64x8xf32> to vector<64x8xbf16>
    %c0_39 = arith.constant 0 : index
    %c0_40 = arith.constant 0 : index
    %c0_41 = arith.constant 0 : index
    %c0_42 = arith.constant 0 : index
    %56 = vector.load %arg6[%c0_39, %c0_40, %c0_41, %c0_42] : memref<1x1x64x8xbf16, #tpu.memory_space<vmem>>, vector<1x1x64x8xbf16>
    %57 = vector.shape_cast %56 : vector<1x1x64x8xbf16> to vector<64x8xbf16>
    %58 = vector.shape_cast %55 : vector<64x8xbf16> to vector<1x1x64x8xbf16>
    tpu.vector_store %arg6[%c0_39, %c0_40, %c0_41, %c0_42], %58 {strides = array<i32>} : memref<1x1x64x8xbf16, #tpu.memory_space<vmem>>, vector<1x1x64x8xbf16>,
    return
  }
  func.func @transform_0(%arg0: i32, %arg1: i32, %arg2: i32) -> (i32, i32, i32, i32) {
    %c0_i32 = arith.constant 0 : i32
    %c0_i32_0 = arith.constant 0 : i32
    %c0_i32_1 = arith.constant 0 : i32
    return %arg0, %c0_i32, %arg1, %c0_i32_0 : i32, i32, i32, i32
  }
  func.func @transform_1(%arg0: i32, %arg1: i32, %arg2: i32) -> (i32, i32, i32) {
    %c0_i32 = arith.constant 0 : i32
    %c0_i32_0 = arith.constant 0 : i32
    %c0_i32_1 = arith.constant 0 : i32
    %c0_i32_2 = arith.constant 0 : i32
    return %c0_i32, %c0_i32_0, %c0_i32_1 : i32, i32, i32
  }
  func.func @transform_2(%arg0: i32, %arg1: i32, %arg2: i32) -> (i32, i32) {
    %c0_i32 = arith.constant 0 : i32
    %c0_i32_0 = arith.constant 0 : i32
    %c0_i32_1 = arith.constant 0 : i32
    return %c0_i32, %c0_i32_0 : i32, i32
  }
  func.func @transform_3(%arg0: i32, %arg1: i32, %arg2: i32) -> (i32, i32, i32, i32) {
    %c0_i32 = arith.constant 0 : i32
    %c0_i32_0 = arith.constant 0 : i32
    return %arg0, %arg2, %arg1, %c0_i32 : i32, i32, i32, i32
  }
}

</mosaic_0001>

<bundles_post_ra>
// kernel: tpu_custom_call.1
= control target key start
LH: loop header
LB: loop body
LE: loop exit
PB: predicated region body
PF: predicated region fallthrough
CT: control target
= control target key end

     0   :  { %s912_s12 = smov 0   ;;  %s914_s13 = smov 0   ;;  %s1113_s0 = inlined_call_operand.vmem [shape: bf16[2,4,64,4], index: 0, kind: input, shape index: {}]   ;;  %s1114_s1 = inlined_call_operand.vmem [shape: bf16[3,4,8], index: 1, kind: input, shape index: {}]   ;;  %s1115_s2 = inlined_call_operand.vmem [shape: f32[1,8], index: 2, kind: input, shape index: {}]   ;;  %s1116_s3 = inlined_call_operand.vmem [shape: bf16[2,4,64,8], index: 3, kind: output, shape index: {}]  }
   0x1   :  { %s916_s14 = smov 0   ;;  %s918_s15 = smov 0  }
   0x2   :  { %s920_s16 = smov 0  }
   0x3 LB: > { %s25_s17 = sadd.s32 1, %s882_s14  ;;  %s32_s18 = sadd.s32 1, %s886_s15  ;;  %s890_s16 = sphi %s920_s16, %s13_s16   ;;  %s886_s15 = sphi %s918_s15, %s1120_s15   ;;  %s882_s14 = sphi %s916_s14, %s1119_s14   ;;  %s878_s13 = sphi %s914_s13, %s1118_s13   ;;  %s874_s12 = sphi %s912_s12, %s1117_s12  }
   0x4   : > { %p26_p0 = scmp.ge.s32.totalorder %s25_s17, 4  ;;  %p691_p1 = scmp.ge.s32.totalorder %s890_s16, 1 }
   0x5   : > { %p167_p2 = scmp.lt.s32.totalorder %s890_s16, 9 }
   0x6   : > { %s1122_s17 = smov (%p26_p0, %s25_s17), 0  ;;  %s1124_s18 = smov (!%p26_p0, %s32_s18), %s886_s15 }
   0x7   : > { %p168_p3 = pnand %p691_p1, %p167_p2  ;;  %p34_p4 = scmp.ge.s32.totalorder %s1124_s18, 2 }
   0x8   : > { %p204_p5 = scmp.lt.s32.totalorder (!%p168_p3), %s878_s13, 1  ;;  %p216_p6 = scmp.lt.s32.totalorder (!%p168_p3), %s874_s12, 3 }
   0x9   : > { %s1126_s18 = smov (%p34_p4, %s1124_s18), 0  ;;  %171 = sbr.rel (%p168_p3) target bundleno = 211 (0xd3), region = 32 }
   0xa   : > { %p326_p7 = scmp.gt.s32.totalorder (!%p168_p3), %s874_s12, 0  ;;  %s962_s29 = sadd.s32 (!%p168_p3), 4294967295, %s874_s12 }
   0xb   : > { %p229_p8 = scmp.gt.s32.totalorder (!%p168_p3), %s962_s29, 0  ;;  %p698_p9 = scmp.lt.s32.totalorder (!%p168_p3), %s962_s29, 3 }
   0xc   : > { %s971_s6 = sadd.s32 (!%p168_p3), 1, %s874_s12  ;;  %p407_p12 = scmp.ge.s32.totalorder (!%p168_p3), %s874_s12, 0 }
   0xd   : > { %p431_p10 = scmp.gt.s32.totalorder (!%p168_p3), %s971_s6, 0  ;;  %p755_p11 = scmp.lt.s32.totalorder (!%p168_p3), %s971_s6, 3 }
   0xe   : > { %vm278_vm0 = vcmask 1041408   ;;  %v733_v0 = vld [vmem:[%s1114_s1 + $0x2] sm:$0x3]  ;;  %v244_v1 = vld [vmem:[%s1114_s1] sm:$0x3]  ;;  %s1128_s13 = smov (!%p204_p5, %s878_s13), 1 }
   0xf   : > { %v376_v2 = vsel %vm278_vm0, %v733_v0, 0  ;;  %v280_v3 = vsel %vm278_vm0, %v244_v1, 0  ;;  %v762_v4 = vld [vmem:[%s1114_s1 + $0x4] sm:$0x3]  ;;  %s786_s25 = sshll.u32 %s1128_s13, 7  ;;  %vm265_vm1 = vcmask 31744  }
  0x10   : > { %809 = vmatpush.bf16.msra.mxu1 %v376_v2  ;;  %289 = vmatpush.bf16.msra.mxu0 %v280_v3  ;;  %v481_v5 = vsel %vm278_vm0, %v762_v4, 0  ;;  %s211_s28 = scalar_lea.vmem %s1113_s0, %s786_s25  ;;  %s695_s22 = sshll.u32 %s1128_s13, 5  ;;  %v1022_v30 = vld [vmem:[%s1115_s2] ss:$0 sm:$0xff]  ;;  %vm563_vm5 = vcmask 60416  }
  0x11   : > { %808 = vmatpush.bf16.msra.mxu3 %v280_v3  ;;  %810 = vmatpush.bf16.msra.mxu2 %v481_v5  ;;  %s327_s30 = scalar_select %p326_p7, %s874_s12, 0 }
  0x12   : > { %s230_s4 = scalar_select %p229_p8, %s962_s29, 0 }
  0x13   : > { %s1130_s30 = smov (!%p216_p6, %s327_s30), 3  ;;  %p408_p13 = scmp.lt.s32.totalorder %s874_s12, 4 }
  0x14   : > { %385 = vmatpush.bf16.msrb.mxu0 %v376_v2  ;;  %s796_s5 = sshll.u32 %s1130_s30, 5  ;;  %s1132_s4 = smov (!%p698_p9, %s230_s4), 3 }
  0x15   : > { %s973_s7 = scalar_lea.vmem %s211_s28, %s796_s5  ;;  %s789_s9 = sshll.u32 %s1132_s4, 5 }
  0x16   : > { %v798_v6 = vld [vmem:[%s973_s7 + $0x8] sm:$0xff]  ;;  %s432_s8 = scalar_select %p431_p10, %s971_s6, 0  ;;  %v799_v10 = vld [vmem:[%s973_s7 + $0x10] sm:$0xff]  ;;  %v797_v12 = vld [vmem:[%s973_s7] sm:$0xff] }
  0x17   : > { %751 = vmatmul.msk.bf16.vlgmr.msra.gmra.mxu1 %vm265_vm1, %v798_v6  ;;  %s235_s10 = scalar_lea.vmem %s211_s28, %s789_s9  ;;  %v800_v14 = vld [vmem:[%s973_s7 + $0x18] sm:$0xff]  ;;  %p311_p0 = scmp.ge.s32.totalorder %s962_s29, 0 }
  0x18   : > { %v790_v7 = vld [vmem:[%s235_s10] sm:$0xff]  ;;  %v791_v8 = vld [vmem:[%s235_s10 + $0x8] sm:$0xff]  ;;  %s1134_s8 = smov (!%p755_p11, %s432_s8), 3  ;;  %v792_v11 = vld [vmem:[%s235_s10 + $0x10] sm:$0xff]  ;;  %p312_p1 = scmp.lt.s32.totalorder %s962_s29, 4 }
  0x19   : > { %s217_s11 = scalar_select %p216_p6, %s874_s12, 3  ;;  %721 = vmatmul.msk.bf16.vlgmr.msra.gmra.mxu0 %vm265_vm1, %v790_v7  ;;  %722 = vmatmul.msk.bf16.vlgmr.msra.gmra.mxu3 %vm265_vm1, %v791_v8  ;;  %v793_v15 = vld [vmem:[%s235_s10 + $0x18] sm:$0xff] }
  0x1a   : > { %s803_s19 = sshll.u32 %s1134_s8, 5  ;;  %490 = vmatpush.bf16.msra.mxu0 %v481_v5  ;;  %p409_p2 = pnand %p408_p13, %p407_p12 }
  0x1b   : > { %s437_s20 = scalar_lea.vmem %s211_s28, %s803_s19  ;;  %s694_s21 = sshll.u32 %s217_s11, 3 }
  0x1c   : > { %v805_v9 = vld [vmem:[%s437_s20 + $0x8] sm:$0xff]  ;;  %s987_s23 = sadd.s32 %s695_s22, %s694_s21  ;;  %v806_v13 = vld [vmem:[%s437_s20 + $0x10] sm:$0xff]  ;;  %v804_v16 = vld [vmem:[%s437_s20] sm:$0xff]  ;;  %p313_p3 = pnand %p312_p1, %p311_p0 }
  0x1d   : > { %780 = vmatmul.msk.bf16.vlgmr.msra.gmra.mxu2 %vm265_vm1, %v805_v9  ;;  %v807_v17 = vld [vmem:[%s437_s20 + $0x18] sm:$0xff]  ;;  %p512_p4 = scmp.ge.s32.totalorder %s971_s6, 0  ;;  %p513_p5 = scmp.lt.s32.totalorder %s971_s6, 4 }
  0x1e   : > { %s754_s13 = scalar_select %p409_p2, 0, 1 }
  0x1f   : > { %s725_s24 = scalar_select %p313_p3, 0, 1 }
  0x20   : > { %p514_p6 = pnand %p513_p5, %p512_p4  ;;  %v1006_v19 = vstv %s754_s13  ;;  %s696_s27 = sshll.u32 %s987_s23, 2 }
  0x21   : > { %v1008_v21 = vstv %s725_s24  ;;  %vm413_vm2 = vcmp.eq.s32.totalorder %v1006_v19, 1  ;;  %s1035_s30 = scalar_lea.vmem %s1116_s3, %s696_s27 }
  0x22   : > { %s783_s25 = scalar_select %p514_p6, 0, 1  ;;  %vm317_vm3 = vcmp.eq.s32.totalorder %v1008_v21, 1 }
  0x24   : > { %v1014_v24 = vstv %s783_s25 }
  0x25   : > { %vm518_vm4 = vcmp.eq.s32.totalorder %v1014_v24, 1 }
  0x27   : > { %752 = vmatmul.msk.bf16.gmra.mxu1 %vm265_vm1, %v799_v10 }
  0x29   : > { %723 = vmatmul.msk.bf16.gmra.mxu3 %vm265_vm1, %v792_v11  ;;  %750 = vmatmul.msk.bf16.vlgmr.msrb.gmra.mxu0 %vm265_vm1, %v797_v12 }
  0x2d   : > { %781 = vmatmul.msk.bf16.gmra.mxu2 %vm265_vm1, %v806_v13 }
  0x37   : > { %753 = vmatmul.msk.bf16.gmra.mxu1 %vm265_vm1, %v800_v14 }
  0x39   : > { %724 = vmatmul.msk.bf16.gmra.mxu3 %vm265_vm1, %v793_v15  ;;  %779 = vmatmul.msk.bf16.vlgmr.msra.gmra.mxu0 %vm265_vm1, %v804_v16 }
  0x3d   : > { %782 = vmatmul.msk.bf16.gmra.mxu2 %vm265_vm1, %v807_v17 }
  0x94   : > { %v392_v18 = vpop.f32.mrf.mxu1 }
  0x95   : > { %v416_v23 = vsel %vm413_vm2, %v392_v18, 0.0 }
  0x96   : > { %v291_v20 = vpop.f32.mrf.mxu0 }
  0x97   : > { %v318_v60 = vsel %vm317_vm3, %v291_v20, 0.0 }
  0x9c   : > { %v394_v22 = vpop.f32.mrf.mxu1  ;;  %v296_v25 = vpop.f32.mrf.mxu3 }
  0x9d   : > { %v320_v26 = vsel %vm317_vm3, %v296_v25, 0.0  ;;  %v417_v36 = vsel %vm413_vm2, %v394_v22, 0.0 }
  0x9e   : > { %v424_v27 = vadd.f32 %v416_v23, %v320_v26  ;;  %v293_v28 = vpop.f32.mrf.mxu0 }
  0x9f   : > { %v319_v16 = vsel %vm317_vm3, %v293_v28, 0.0 }
  0xa0   : > { %v497_v29 = vpop.f32.mrf.mxu2 }
  0xa1   : > { %v521_v31 = vsel %vm518_vm4, %v497_v29, 0.0 }
  0xa2   : > { %v529_v32 = vadd.f32 %v521_v31, %v424_v27 }
  0xa4   : > { %v541_v33 = vadd.f32 %v1022_v30, %v529_v32  ;;  %v298_v34 = vpop.f32.mrf.mxu3  ;;  %v397_v35 = vpop.f32.mrf.mxu1 }
  0xa5   : > { %v321_v37 = vsel %vm317_vm3, %v298_v34, 0.0  ;;  %v418_v45 = vsel %vm413_vm2, %v397_v35, 0.0 }
  0xa6   : > { %v549_v38 = vmax.f32 %v541_v33, 0.0  ;;  %v425_v39 = vadd.f32 %v417_v36, %v321_v37  ;;  %v387_v40 = vpop.f32.mrf.mxu0 }
  0xa7   : > { %v414_v57 = vsel %vm413_vm2, %v387_v40, 0.0 }
  0xa8   : > { %v557_v41 = vpack.c.bf16 %v549_v38, %v549_v38  ;;  %v499_v42 = vpop.f32.mrf.mxu2  ;;  %v422_v63 = vadd.f32 %v414_v57, %v318_v60 }
  0xa9   : > { %v522_v43 = vsel %vm518_vm4, %v499_v42, 0.0 }
  0xaa   : > { %566 = vst.msk [vmem:[%s1035_s30 + $0x8] sm:$0xf] %vm563_vm5, %v557_v41  ;;  %v530_v44 = vadd.f32 %v522_v43, %v425_v39 }
  0xac   : > { %v542_v46 = vadd.f32 %v1022_v30, %v530_v44  ;;  %v301_v47 = vpop.f32.mrf.mxu3  ;;  %v399_v51 = vpop.f32.mrf.mxu1 }
  0xad   : > { %v322_v48 = vsel %vm317_vm3, %v301_v47, 0.0  ;;  %v419_v61 = vsel %vm413_vm2, %v399_v51, 0.0 }
  0xae   : > { %v550_v49 = vmax.f32 %v542_v46, 0.0  ;;  %v426_v50 = vadd.f32 %v418_v45, %v322_v48  ;;  %v389_v52 = vpop.f32.mrf.mxu0 }
  0xaf   : > { %v415_v11 = vsel %vm413_vm2, %v389_v52, 0.0 }
  0xb0   : > { %v558_v53 = vpack.c.bf16 %v550_v49, %v550_v49  ;;  %v502_v54 = vpop.f32.mrf.mxu2  ;;  %v423_v18 = vadd.f32 %v415_v11, %v319_v16 }
  0xb1   : > { %v523_v55 = vsel %vm518_vm4, %v502_v54, 0.0 }
  0xb2   : > { %567 = vst.msk [vmem:[%s1035_s30 + $0xc] sm:$0xf] %vm563_vm5, %v558_v53  ;;  %v531_v56 = vadd.f32 %v523_v55, %v426_v50 }
  0xb4   : > { %v543_v58 = vadd.f32 %v1022_v30, %v531_v56  ;;  %v303_v59 = vpop.f32.mrf.mxu3  ;;  %v402_v6 = vpop.f32.mrf.mxu1 }
  0xb5   : > { %v323_v62 = vsel %vm317_vm3, %v303_v59, 0.0  ;;  %v420_v12 = vsel %vm413_vm2, %v402_v6, 0.0 }
  0xb6   : > { %v551_v0 = vmax.f32 %v543_v58, 0.0  ;;  %v427_v1 = vadd.f32 %v419_v61, %v323_v62  ;;  %v492_v2 = vpop.f32.mrf.mxu0 }
  0xb7   : > { %v519_v3 = vsel %vm518_vm4, %v492_v2, 0.0 }
  0xb8   : > { %v559_v4 = vpack.c.bf16 %v551_v0, %v551_v0  ;;  %v504_v5 = vpop.f32.mrf.mxu2  ;;  %v527_v7 = vadd.f32 %v519_v3, %v422_v63 }
  0xb9   : > { %v524_v8 = vsel %vm518_vm4, %v504_v5, 0.0 }
  0xba   : > { %568 = vst.msk [vmem:[%s1035_s30 + $0x10] sm:$0xf] %vm563_vm5, %v559_v4  ;;  %v532_v9 = vadd.f32 %v524_v8, %v427_v1  ;;  %v539_v10 = vadd.f32 %v1022_v30, %v527_v7 }
  0xbc   : > { %v544_v13 = vadd.f32 %v1022_v30, %v532_v9  ;;  %v547_v14 = vmax.f32 %v539_v10, 0.0  ;;  %v306_v15 = vpop.f32.mrf.mxu3  ;;  %v404_v33 = vpop.f32.mrf.mxu1 }
  0xbd   : > { %v324_v17 = vsel %vm317_vm3, %v306_v15, 0.0  ;;  %v421_v38 = vsel %vm413_vm2, %v404_v33, 0.0 }
  0xbe   : > { %v552_v20 = vmax.f32 %v544_v13, 0.0  ;;  %v555_v22 = vpack.c.bf16 %v547_v14, %v547_v14  ;;  %v428_v23 = vadd.f32 %v420_v12, %v324_v17  ;;  %v494_v25 = vpop.f32.mrf.mxu0 }
  0xbf   : > { %v520_v26 = vsel %vm518_vm4, %v494_v25, 0.0 }
  0xc0   : > { %v560_v27 = vpack.c.bf16 %v552_v20, %v552_v20  ;;  %564 = vst.msk [vmem:[%s1035_s30] sm:$0xf] %vm563_vm5, %v555_v22  ;;  %v507_v29 = vpop.f32.mrf.mxu2  ;;  %v528_v31 = vadd.f32 %v520_v26, %v423_v18 }
  0xc1   : > { %v525_v28 = vsel %vm518_vm4, %v507_v29, 0.0 }
  0xc2   : > { %569 = vst.msk [vmem:[%s1035_s30 + $0x14] sm:$0xf] %vm563_vm5, %v560_v27  ;;  %v533_v32 = vadd.f32 %v525_v28, %v428_v23  ;;  %v540_v34 = vadd.f32 %v1022_v30, %v528_v31 }
  0xc4   : > { %v545_v35 = vadd.f32 %v1022_v30, %v533_v32  ;;  %v548_v36 = vmax.f32 %v540_v34, 0.0  ;;  %v308_v37 = vpop.f32.mrf.mxu3 }
  0xc5   : > { %v325_v39 = vsel %vm317_vm3, %v308_v37, 0.0 }
  0xc6   : > { %v553_v40 = vmax.f32 %v545_v35, 0.0  ;;  %v556_v41 = vpack.c.bf16 %v548_v36, %v548_v36  ;;  %v429_v42 = vadd.f32 %v421_v38, %v325_v39 }
  0xc8   : > { %v561_v43 = vpack.c.bf16 %v553_v40, %v553_v40  ;;  %565 = vst.msk [vmem:[%s1035_s30 + $0x4] sm:$0xf] %vm563_vm5, %v556_v41  ;;  %v509_v44 = vpop.f32.mrf.mxu2 }
  0xc9   : > { %v526_v45 = vsel %vm518_vm4, %v509_v44, 0.0 }
  0xca   : > { %570 = vst.msk [vmem:[%s1035_s30 + $0x18] sm:$0xf] %vm563_vm5, %v561_v43  ;;  %v534_v46 = vadd.f32 %v526_v45, %v429_v42 }
  0xcc   : > { %v546_v47 = vadd.f32 %v1022_v30, %v534_v46 }
  0xce   : > { %v554_v19 = vmax.f32 %v546_v47, 0.0 }
  0xd0   : > { %v562_v48 = vpack.c.bf16 %v554_v19, %v554_v19 }
  0xd2   : > { %571 = vst.msk [vmem:[%s1035_s30 + $0x1c] sm:$0xf] %vm563_vm5, %v562_v48 }
  0xd3 PF: > { %s13_s16 = sadd.s32 1, %s890_s16   ;;  %s1117_s12 = smov %s882_s14 }
  0xd4   : > { %p10_p7 = scmp.ge.s32.totalorder %s13_s16, 10   ;;  %s1118_s13 = smov %s886_s15 }
  0xd5   : > { %s1119_s14 = smov %s1122_s17  ;;  %s1120_s15 = smov %s1126_s18 }
  0xd6   :  { %12 = sbr.rel (!%p10_p7) target bundleno = 3 (0x3), region = 67 }

</bundles_post_ra>
